<compile_context>
chip_gen: v5e
topology: v5e:2x2
jax: 0.10.0
libtpu: 0.0.40
codegen_flags: <defaults>
</compile_context>

<pallas_src>
import jax
import jax.numpy as jnp
from jax.experimental import pallas as pl
from jax.experimental.pallas import tpu as pltpu


# ----------------------------------------------------------------------------
# In-kernel helpers (operate on values of shape (C, L): channels x time).
# ----------------------------------------------------------------------------
def _shift_right(a, s):
    """Causal shift along the time (lane) axis by static s, zero-filled."""
    if s == 0:
        return a
    L = a.shape[-1]
    if s >= L:
        return jnp.zeros_like(a)
    rolled = pltpu.roll(a, shift=s, axis=1)
    t = jax.lax.broadcasted_iota(jnp.int32, a.shape, 1)
    return jnp.where(t >= s, rolled, 0.0)


def _causal_conv(a, w_ref, b_ref, k, dilation):
    """a: (C_in, L); w_ref: (k, C_out, C_in); b_ref: (C_out, 1)."""
    # Tap j = k-1 needs no shift; tap j shifts by (k-1-j)*dilation.
    acc = jnp.dot(w_ref[k - 1], a, preferred_element_type=jnp.float32)
    for j in range(k - 1):
        s = (k - 1 - j) * dilation
        acc = acc + jnp.dot(w_ref[j], _shift_right(a, s),
                            preferred_element_type=jnp.float32)
    return acc + b_ref[...]


def _make_tcn_kernel(layer_cfgs, kernel_size):
    """layer_cfgs: static list of (dilation, has_downsample) per level."""

    def kernel(*refs):
        x_ref = refs[0]
        out_ref = refs[-1]
        a = x_ref[0]                                      # (C_in, L)
        idx = 1
        for dilation, has_ds in layer_cfgs:
            w1_ref, b1_ref, w2_ref, b2_ref = refs[idx:idx + 4]
            idx += 4
            if has_ds:
                wd_ref, bd_ref = refs[idx:idx + 2]
                idx += 2
            out = jnp.maximum(
                _causal_conv(a, w1_ref, b1_ref, kernel_size, dilation), 0.0)
            # Dropout: identity (eval mode).
            out = jnp.maximum(
                _causal_conv(out, w2_ref, b2_ref, kernel_size, dilation), 0.0)
            if has_ds:
                res = (jnp.dot(wd_ref[...], a,
                               preferred_element_type=jnp.float32)
                       + bd_ref[...])
            else:
                res = a
            a = jnp.maximum(out + res, 0.0)
        out_ref[0] = a

    return kernel


# ----------------------------------------------------------------------------
# Wrapper: parameter prep (weight_norm) + single pallas_call.
# ----------------------------------------------------------------------------
def _weight_norm(v, g):
    """PyTorch weight_norm(dim=0): w = g * v / ||v|| over non-dim0 axes."""
    norm = jnp.sqrt(jnp.sum(v * v, axis=tuple(range(1, v.ndim)), keepdims=True))
    return g.reshape((-1,) + (1,) * (v.ndim - 1)) * v / norm


_IDX3 = lambda b: (0, 0, 0)
_IDX2 = lambda b: (0, 0)


def temporal_conv_net(x, params, kernel_size=2):
    """x: (B, C_in, L) float32; params: per-layer dicts (see __main__)."""
    B, c0, L = x.shape

    inputs = [x]
    in_specs = [pl.BlockSpec((1, c0, L), lambda b: (b, 0, 0))]
    layer_cfgs = []

    c_prev = c0
    for i, p in enumerate(params):
        dilation = 2 ** i
        c_out = p["b1"].shape[0]
        has_ds = "wd" in p
        layer_cfgs.append((dilation, has_ds))

        # Effective (post weight-norm) weights, laid out (k, C_out, C_in).
        w1 = jnp.transpose(_weight_norm(p["w1_v"], p["w1_g"]), (2, 0, 1))
        w2 = jnp.transpose(_weight_norm(p["w2_v"], p["w2_g"]), (2, 0, 1))
        b1 = p["b1"].reshape(-1, 1)
        b2 = p["b2"].reshape(-1, 1)

        for arr in (w1, b1, w2, b2):
            inputs.append(arr)
            in_specs.append(
                pl.BlockSpec(arr.shape, _IDX3 if arr.ndim == 3 else _IDX2))
        if has_ds:
            wd = p["wd"][:, :, 0] if p["wd"].ndim == 3 else p["wd"]
            bd = p["bd"].reshape(-1, 1)
            for arr in (wd, bd):
                inputs.append(arr)
                in_specs.append(pl.BlockSpec(arr.shape, _IDX2))
        c_prev = c_out

    c_last = c_prev
    return pl.pallas_call(
        _make_tcn_kernel(layer_cfgs, kernel_size),
        out_shape=jax.ShapeDtypeStruct((B, c_last, L), jnp.float32),
        grid_spec=pltpu.PrefetchScalarGridSpec(
            num_scalar_prefetch=0,
            grid=(B,),
            in_specs=in_specs,
            out_specs=pl.BlockSpec((1, c_last, L), lambda b: (b, 0, 0)),
        ),
        compiler_params=pltpu.CompilerParams(
            dimension_semantics=("parallel",)),
    )(*inputs)


# ----------------------------------------------------------------------------
# Pure-JAX reference mirroring the PyTorch module (for a numerical check).
# ----------------------------------------------------------------------------
def _ref_causal_conv(x, w, b, dilation, kernel_size):
    pad = (kernel_size - 1) * dilation
    y = jax.lax.conv_general_dilated(
        x, w, window_strides=(1,), padding=[(pad, pad)],
        rhs_dilation=(dilation,),
        dimension_numbers=("NCH", "OIH", "NCH"))
    y = y[:, :, :x.shape[2]]                      # Chomp1d
    return y + b[None, :, None]


def ref_temporal_conv_net(x, params, kernel_size=2):
    a = x
    for i, p in enumerate(params):
        dilation = 2 ** i
        w1 = _weight_norm(p["w1_v"], p["w1_g"])
        w2 = _weight_norm(p["w2_v"], p["w2_g"])
        out = jax.nn.relu(_ref_causal_conv(a, w1, p["b1"], dilation, kernel_size))
        out = jax.nn.relu(_ref_causal_conv(out, w2, p["b2"], dilation, kernel_size))
        if "wd" in p:
            res = jnp.einsum("oc,bcl->bol", p["wd"], a) + p["bd"][None, :, None]
        else:
            res = a
        a = jax.nn.relu(out + res)
    return a


if __name__ == "__main__":
    B, C_IN, L = 2, 4, 16
    NUM_CHANNELS = [32, 32]        # layer 0 has a 1x1 downsample, layer 1 not
    KERNEL_SIZE = 2

    kit = iter(jax.random.split(jax.random.PRNGKey(0), 64))

    def rnd(shape, scale=1.0):
        return scale * jax.random.normal(next(kit), shape, dtype=jnp.float32)

    x = rnd((B, C_IN, L))

    params = []
    c_prev = C_IN
    for c_out in NUM_CHANNELS:
        p = {
            "w1_v": rnd((c_out, c_prev, KERNEL_SIZE), 0.5),
            "w1_g": 1.0 + rnd((c_out,), 0.1),
            "b1":   rnd((c_out,), 0.1),
            "w2_v": rnd((c_out, c_out, KERNEL_SIZE), 0.5),
            "w2_g": 1.0 + rnd((c_out,), 0.1),
            "b2":   rnd((c_out,), 0.1),
        }
        if c_prev != c_out:
            p["wd"] = rnd((c_out, c_prev), 0.3)
            p["bd"] = rnd((c_out,), 0.1)
        params.append(p)
        c_prev = c_out

    out = temporal_conv_net(x, params, kernel_size=KERNEL_SIZE)
    out = jax.block_until_ready(out)

    ref = ref_temporal_conv_net(x, params, kernel_size=KERNEL_SIZE)
    assert out.shape == (B, NUM_CHANNELS[-1], L), out.shape
    err = float(jnp.max(jnp.abs(out - ref)))
    assert err < 1e-4, f"max abs err {err}"
    print("KERNEL_OK")
</pallas_src>

<mosaic_0001>
module attributes {stable_mosaic.version = 11 : i64} {
  func.func @kernel(%arg0: i32, %arg1: memref<1x4x16xf32, #tpu.memory_space<vmem>>, %arg2: memref<2x32x4xf32, #tpu.memory_space<vmem>>, %arg3: memref<32x1xf32, #tpu.memory_space<vmem>>, %arg4: memref<2x32x32xf32, #tpu.memory_space<vmem>>, %arg5: memref<32x1xf32, #tpu.memory_space<vmem>>, %arg6: memref<32x4xf32, #tpu.memory_space<vmem>>, %arg7: memref<32x1xf32, #tpu.memory_space<vmem>>, %arg8: memref<2x32x32xf32, #tpu.memory_space<vmem>>, %arg9: memref<32x1xf32, #tpu.memory_space<vmem>>, %arg10: memref<2x32x32xf32, #tpu.memory_space<vmem>>, %arg11: memref<32x1xf32, #tpu.memory_space<vmem>>, %arg12: memref<1x32x16xf32, #tpu.memory_space<vmem>>) attributes {dimension_semantics = [#tpu.dimension_semantics<parallel>], iteration_bounds = array<i64: 2>, scalar_prefetch = 0 : i64, scratch_operands = 0 : i64, tpu.core_type = #tpu.core_type<tc>, window_params = [{transform_indices = @transform_0, window_bounds = array<i64: 1, 4, 16>}, {pipeline_mode = #tpu.pipeline_mode<synchronous>, transform_indices = @transform_1, window_bounds = array<i64: 2, 32, 4>}, {pipeline_mode = #tpu.pipeline_mode<synchronous>, transform_indices = @transform_2, window_bounds = array<i64: 32, 1>}, {pipeline_mode = #tpu.pipeline_mode<synchronous>, transform_indices = @transform_3, window_bounds = array<i64: 2, 32, 32>}, {pipeline_mode = #tpu.pipeline_mode<synchronous>, transform_indices = @transform_4, window_bounds = array<i64: 32, 1>}, {pipeline_mode = #tpu.pipeline_mode<synchronous>, transform_indices = @transform_5, window_bounds = array<i64: 32, 4>}, {pipeline_mode = #tpu.pipeline_mode<synchronous>, transform_indices = @transform_6, window_bounds = array<i64: 32, 1>}, {pipeline_mode = #tpu.pipeline_mode<synchronous>, transform_indices = @transform_7, window_bounds = array<i64: 2, 32, 32>}, {pipeline_mode = #tpu.pipeline_mode<synchronous>, transform_indices = @transform_8, window_bounds = array<i64: 32, 1>}, {pipeline_mode = #tpu.pipeline_mode<synchronous>, transform_indices = @transform_9, window_bounds = array<i64: 2, 32, 32>}, {pipeline_mode = #tpu.pipeline_mode<synchronous>, transform_indices = @transform_10, window_bounds = array<i64: 32, 1>}, {transform_indices = @transform_11, window_bounds = array<i64: 1, 32, 16>}]} {
    %c0 = arith.constant 0 : index
    %c0_0 = arith.constant 0 : index
    %c0_1 = arith.constant 0 : index
    %0 = vector.load %arg1[%c0, %c0_0, %c0_1] : memref<1x4x16xf32, #tpu.memory_space<vmem>>, vector<1x4x16xf32>
    %1 = vector.shape_cast %0 : vector<1x4x16xf32> to vector<4x16xf32>
    %c1 = arith.constant 1 : index
    %c0_2 = arith.constant 0 : index
    %c0_3 = arith.constant 0 : index
    %2 = vector.load %arg2[%c1, %c0_2, %c0_3] : memref<2x32x4xf32, #tpu.memory_space<vmem>>, vector<1x32x4xf32>
    %3 = vector.shape_cast %2 : vector<1x32x4xf32> to vector<32x4xf32>
    %cst = arith.constant dense<0.000000e+00> : vector<32x16xf32>
    %4 = tpu.matmul %3, %1, %cst {dimension_numbers = #tpu.dot_dimension_numbers<[1], [0], [0], [1], [0, 0, 1, 1], [], []>} : vector<32x4xf32>, vector<4x16xf32>, vector<32x16xf32> -> vector<32x16xf32>
    %c0_4 = arith.constant 0 : index
    %c0_5 = arith.constant 0 : index
    %c0_6 = arith.constant 0 : index
    %5 = vector.load %arg2[%c0_4, %c0_5, %c0_6] : memref<2x32x4xf32, #tpu.memory_space<vmem>>, vector<1x32x4xf32>
    %6 = vector.shape_cast %5 : vector<1x32x4xf32> to vector<32x4xf32>
    %c1_i32 = arith.constant 1 : i32
    %7 = tpu.dynamic_rotate %1 by %c1_i32 dim 1 : vector<4x16xf32>, i32 -> vector<4x16xf32>
    %8 = tpu.iota {dimensions = array<i32: 1>} : vector<4x16xi32>
    %c1_i32_7 = arith.constant 1 : i32
    %9 = vector.broadcast %c1_i32_7 : i32 to vector<4x16xi32>
    %10 = arith.cmpi sge, %8, %9 : vector<4x16xi32>
    %cst_8 = arith.constant 0.000000e+00 : f32
    %11 = vector.broadcast %cst_8 : f32 to vector<4x16xf32>
    %12 = arith.select %10, %7, %11 : vector<4x16xi1>, vector<4x16xf32>
    %cst_9 = arith.constant dense<0.000000e+00> : vector<32x16xf32>
    %13 = tpu.matmul %6, %12, %cst_9 {dimension_numbers = #tpu.dot_dimension_numbers<[1], [0], [0], [1], [0, 0, 1, 1], [], []>} : vector<32x4xf32>, vector<4x16xf32>, vector<32x16xf32> -> vector<32x16xf32>
    %14 = arith.addf %4, %13 : vector<32x16xf32>
    %c0_10 = arith.constant 0 : index
    %c0_11 = arith.constant 0 : index
    %15 = vector.load %arg3[%c0_10, %c0_11] : memref<32x1xf32, #tpu.memory_space<vmem>>, vector<32x1xf32>
    %16 = vector.broadcast %15 : vector<32x1xf32> to vector<32x16xf32>
    %17 = arith.addf %14, %16 : vector<32x16xf32>
    %cst_12 = arith.constant 0.000000e+00 : f32
    %18 = vector.broadcast %cst_12 : f32 to vector<32x16xf32>
    %19 = arith.maximumf %17, %18 : vector<32x16xf32>
    %c1_13 = arith.constant 1 : index
    %c0_14 = arith.constant 0 : index
    %c0_15 = arith.constant 0 : index
    %20 = vector.load %arg4[%c1_13, %c0_14, %c0_15] : memref<2x32x32xf32, #tpu.memory_space<vmem>>, vector<1x32x32xf32>
    %21 = vector.shape_cast %20 : vector<1x32x32xf32> to vector<32x32xf32>
    %cst_16 = arith.constant dense<0.000000e+00> : vector<32x16xf32>
    %22 = tpu.matmul %21, %19, %cst_16 {dimension_numbers = #tpu.dot_dimension_numbers<[1], [0], [0], [1], [0, 0, 1, 1], [], []>} : vector<32x32xf32>, vector<32x16xf32>, vector<32x16xf32> -> vector<32x16xf32>
    %c0_17 = arith.constant 0 : index
    %c0_18 = arith.constant 0 : index
    %c0_19 = arith.constant 0 : index
    %23 = vector.load %arg4[%c0_17, %c0_18, %c0_19] : memref<2x32x32xf32, #tpu.memory_space<vmem>>, vector<1x32x32xf32>
    %24 = vector.shape_cast %23 : vector<1x32x32xf32> to vector<32x32xf32>
    %c1_i32_20 = arith.constant 1 : i32
    %25 = tpu.dynamic_rotate %19 by %c1_i32_20 dim 1 : vector<32x16xf32>, i32 -> vector<32x16xf32>
    %26 = tpu.iota {dimensions = array<i32: 1>} : vector<32x16xi32>
    %c1_i32_21 = arith.constant 1 : i32
    %27 = vector.broadcast %c1_i32_21 : i32 to vector<32x16xi32>
    %28 = arith.cmpi sge, %26, %27 : vector<32x16xi32>
    %cst_22 = arith.constant 0.000000e+00 : f32
    %29 = vector.broadcast %cst_22 : f32 to vector<32x16xf32>
    %30 = arith.select %28, %25, %29 : vector<32x16xi1>, vector<32x16xf32>
    %cst_23 = arith.constant dense<0.000000e+00> : vector<32x16xf32>
    %31 = tpu.matmul %24, %30, %cst_23 {dimension_numbers = #tpu.dot_dimension_numbers<[1], [0], [0], [1], [0, 0, 1, 1], [], []>} : vector<32x32xf32>, vector<32x16xf32>, vector<32x16xf32> -> vector<32x16xf32>
    %32 = arith.addf %22, %31 : vector<32x16xf32>
    %c0_24 = arith.constant 0 : index
    %c0_25 = arith.constant 0 : index
    %33 = vector.load %arg5[%c0_24, %c0_25] : memref<32x1xf32, #tpu.memory_space<vmem>>, vector<32x1xf32>
    %34 = vector.broadcast %33 : vector<32x1xf32> to vector<32x16xf32>
    %35 = arith.addf %32, %34 : vector<32x16xf32>
    %cst_26 = arith.constant 0.000000e+00 : f32
    %36 = vector.broadcast %cst_26 : f32 to vector<32x16xf32>
    %37 = arith.maximumf %35, %36 : vector<32x16xf32>
    %c0_27 = arith.constant 0 : index
    %c0_28 = arith.constant 0 : index
    %38 = vector.load %arg6[%c0_27, %c0_28] : memref<32x4xf32, #tpu.memory_space<vmem>>, vector<32x4xf32>
    %cst_29 = arith.constant dense<0.000000e+00> : vector<32x16xf32>
    %39 = tpu.matmul %38, %1, %cst_29 {dimension_numbers = #tpu.dot_dimension_numbers<[1], [0], [0], [1], [0, 0, 1, 1], [], []>} : vector<32x4xf32>, vector<4x16xf32>, vector<32x16xf32> -> vector<32x16xf32>
    %c0_30 = arith.constant 0 : index
    %c0_31 = arith.constant 0 : index
    %40 = vector.load %arg7[%c0_30, %c0_31] : memref<32x1xf32, #tpu.memory_space<vmem>>, vector<32x1xf32>
    %41 = vector.broadcast %40 : vector<32x1xf32> to vector<32x16xf32>
    %42 = arith.addf %39, %41 : vector<32x16xf32>
    %43 = arith.addf %37, %42 : vector<32x16xf32>
    %cst_32 = arith.constant 0.000000e+00 : f32
    %44 = vector.broadcast %cst_32 : f32 to vector<32x16xf32>
    %45 = arith.maximumf %43, %44 : vector<32x16xf32>
    %c1_33 = arith.constant 1 : index
    %c0_34 = arith.constant 0 : index
    %c0_35 = arith.constant 0 : index
    %46 = vector.load %arg8[%c1_33, %c0_34, %c0_35] : memref<2x32x32xf32, #tpu.memory_space<vmem>>, vector<1x32x32xf32>
    %47 = vector.shape_cast %46 : vector<1x32x32xf32> to vector<32x32xf32>
    %cst_36 = arith.constant dense<0.000000e+00> : vector<32x16xf32>
    %48 = tpu.matmul %47, %45, %cst_36 {dimension_numbers = #tpu.dot_dimension_numbers<[1], [0], [0], [1], [0, 0, 1, 1], [], []>} : vector<32x32xf32>, vector<32x16xf32>, vector<32x16xf32> -> vector<32x16xf32>
    %c0_37 = arith.constant 0 : index
    %c0_38 = arith.constant 0 : index
    %c0_39 = arith.constant 0 : index
    %49 = vector.load %arg8[%c0_37, %c0_38, %c0_39] : memref<2x32x32xf32, #tpu.memory_space<vmem>>, vector<1x32x32xf32>
    %50 = vector.shape_cast %49 : vector<1x32x32xf32> to vector<32x32xf32>
    %c2_i32 = arith.constant 2 : i32
    %51 = tpu.dynamic_rotate %45 by %c2_i32 dim 1 : vector<32x16xf32>, i32 -> vector<32x16xf32>
    %52 = tpu.iota {dimensions = array<i32: 1>} : vector<32x16xi32>
    %c2_i32_40 = arith.constant 2 : i32
    %53 = vector.broadcast %c2_i32_40 : i32 to vector<32x16xi32>
    %54 = arith.cmpi sge, %52, %53 : vector<32x16xi32>
    %cst_41 = arith.constant 0.000000e+00 : f32
    %55 = vector.broadcast %cst_41 : f32 to vector<32x16xf32>
    %56 = arith.select %54, %51, %55 : vector<32x16xi1>, vector<32x16xf32>
    %cst_42 = arith.constant dense<0.000000e+00> : vector<32x16xf32>
    %57 = tpu.matmul %50, %56, %cst_42 {dimension_numbers = #tpu.dot_dimension_numbers<[1], [0], [0], [1], [0, 0, 1, 1], [], []>} : vector<32x32xf32>, vector<32x16xf32>, vector<32x16xf32> -> vector<32x16xf32>
    %58 = arith.addf %48, %57 : vector<32x16xf32>
    %c0_43 = arith.constant 0 : index
    %c0_44 = arith.constant 0 : index
    %59 = vector.load %arg9[%c0_43, %c0_44] : memref<32x1xf32, #tpu.memory_space<vmem>>, vector<32x1xf32>
    %60 = vector.broadcast %59 : vector<32x1xf32> to vector<32x16xf32>
    %61 = arith.addf %58, %60 : vector<32x16xf32>
    %cst_45 = arith.constant 0.000000e+00 : f32
    %62 = vector.broadcast %cst_45 : f32 to vector<32x16xf32>
    %63 = arith.maximumf %61, %62 : vector<32x16xf32>
    %c1_46 = arith.constant 1 : index
    %c0_47 = arith.constant 0 : index
    %c0_48 = arith.constant 0 : index
    %64 = vector.load %arg10[%c1_46, %c0_47, %c0_48] : memref<2x32x32xf32, #tpu.memory_space<vmem>>, vector<1x32x32xf32>
    %65 = vector.shape_cast %64 : vector<1x32x32xf32> to vector<32x32xf32>
    %cst_49 = arith.constant dense<0.000000e+00> : vector<32x16xf32>
    %66 = tpu.matmul %65, %63, %cst_49 {dimension_numbers = #tpu.dot_dimension_numbers<[1], [0], [0], [1], [0, 0, 1, 1], [], []>} : vector<32x32xf32>, vector<32x16xf32>, vector<32x16xf32> -> vector<32x16xf32>
    %c0_50 = arith.constant 0 : index
    %c0_51 = arith.constant 0 : index
    %c0_52 = arith.constant 0 : index
    %67 = vector.load %arg10[%c0_50, %c0_51, %c0_52] : memref<2x32x32xf32, #tpu.memory_space<vmem>>, vector<1x32x32xf32>
    %68 = vector.shape_cast %67 : vector<1x32x32xf32> to vector<32x32xf32>
    %c2_i32_53 = arith.constant 2 : i32
    %69 = tpu.dynamic_rotate %63 by %c2_i32_53 dim 1 : vector<32x16xf32>, i32 -> vector<32x16xf32>
    %70 = tpu.iota {dimensions = array<i32: 1>} : vector<32x16xi32>
    %c2_i32_54 = arith.constant 2 : i32
    %71 = vector.broadcast %c2_i32_54 : i32 to vector<32x16xi32>
    %72 = arith.cmpi sge, %70, %71 : vector<32x16xi32>
    %cst_55 = arith.constant 0.000000e+00 : f32
    %73 = vector.broadcast %cst_55 : f32 to vector<32x16xf32>
    %74 = arith.select %72, %69, %73 : vector<32x16xi1>, vector<32x16xf32>
    %cst_56 = arith.constant dense<0.000000e+00> : vector<32x16xf32>
    %75 = tpu.matmul %68, %74, %cst_56 {dimension_numbers = #tpu.dot_dimension_numbers<[1], [0], [0], [1], [0, 0, 1, 1], [], []>} : vector<32x32xf32>, vector<32x16xf32>, vector<32x16xf32> -> vector<32x16xf32>
    %76 = arith.addf %66, %75 : vector<32x16xf32>
    %c0_57 = arith.constant 0 : index
    %c0_58 = arith.constant 0 : index
    %77 = vector.load %arg11[%c0_57, %c0_58] : memref<32x1xf32, #tpu.memory_space<vmem>>, vector<32x1xf32>
    %78 = vector.broadcast %77 : vector<32x1xf32> to vector<32x16xf32>
    %79 = arith.addf %76, %78 : vector<32x16xf32>
    %cst_59 = arith.constant 0.000000e+00 : f32
    %80 = vector.broadcast %cst_59 : f32 to vector<32x16xf32>
    %81 = arith.maximumf %79, %80 : vector<32x16xf32>
    %82 = arith.addf %81, %45 : vector<32x16xf32>
    %cst_60 = arith.constant 0.000000e+00 : f32
    %83 = vector.broadcast %cst_60 : f32 to vector<32x16xf32>
    %84 = arith.maximumf %82, %83 : vector<32x16xf32>
    %c0_61 = arith.constant 0 : index
    %c0_62 = arith.constant 0 : index
    %c0_63 = arith.constant 0 : index
    %85 = vector.load %arg12[%c0_61, %c0_62, %c0_63] : memref<1x32x16xf32, #tpu.memory_space<vmem>>, vector<1x32x16xf32>
    %86 = vector.shape_cast %85 : vector<1x32x16xf32> to vector<32x16xf32>
    %87 = vector.shape_cast %84 : vector<32x16xf32> to vector<1x32x16xf32>
    tpu.vector_store %arg12[%c0_61, %c0_62, %c0_63], %87 {strides = array<i32>} : memref<1x32x16xf32, #tpu.memory_space<vmem>>, vector<1x32x16xf32>,
    return
  }
  func.func @transform_0(%arg0: i32) -> (i32, i32, i32) {
    %c0_i32 = arith.constant 0 : i32
    %c0_i32_0 = arith.constant 0 : i32
    %c0_i32_1 = arith.constant 0 : i32
    return %arg0, %c0_i32, %c0_i32_0 : i32, i32, i32
  }
  func.func @transform_1(%arg0: i32) -> (i32, i32, i32) {
    %c0_i32 = arith.constant 0 : i32
    %c0_i32_0 = arith.constant 0 : i32
    %c0_i32_1 = arith.constant 0 : i32
    %c0_i32_2 = arith.constant 0 : i32
    return %c0_i32, %c0_i32_0, %c0_i32_1 : i32, i32, i32
  }
  func.func @transform_2(%arg0: i32) -> (i32, i32) {
    %c0_i32 = arith.constant 0 : i32
    %c0_i32_0 = arith.constant 0 : i32
    %c0_i32_1 = arith.constant 0 : i32
    return %c0_i32, %c0_i32_0 : i32, i32
  }
  func.func @transform_3(%arg0: i32) -> (i32, i32, i32) {
    %c0_i32 = arith.constant 0 : i32
    %c0_i32_0 = arith.constant 0 : i32
    %c0_i32_1 = arith.constant 0 : i32
    %c0_i32_2 = arith.constant 0 : i32
    return %c0_i32, %c0_i32_0, %c0_i32_1 : i32, i32, i32
  }
  func.func @transform_4(%arg0: i32) -> (i32, i32) {
    %c0_i32 = arith.constant 0 : i32
    %c0_i32_0 = arith.constant 0 : i32
    %c0_i32_1 = arith.constant 0 : i32
    return %c0_i32, %c0_i32_0 : i32, i32
  }
  func.func @transform_5(%arg0: i32) -> (i32, i32) {
    %c0_i32 = arith.constant 0 : i32
    %c0_i32_0 = arith.constant 0 : i32
    %c0_i32_1 = arith.constant 0 : i32
    return %c0_i32, %c0_i32_0 : i32, i32
  }
  func.func @transform_6(%arg0: i32) -> (i32, i32) {
    %c0_i32 = arith.constant 0 : i32
    %c0_i32_0 = arith.constant 0 : i32
    %c0_i32_1 = arith.constant 0 : i32
    return %c0_i32, %c0_i32_0 : i32, i32
  }
  func.func @transform_7(%arg0: i32) -> (i32, i32, i32) {
    %c0_i32 = arith.constant 0 : i32
    %c0_i32_0 = arith.constant 0 : i32
    %c0_i32_1 = arith.constant 0 : i32
    %c0_i32_2 = arith.constant 0 : i32
    return %c0_i32, %c0_i32_0, %c0_i32_1 : i32, i32, i32
  }
  func.func @transform_8(%arg0: i32) -> (i32, i32) {
    %c0_i32 = arith.constant 0 : i32
    %c0_i32_0 = arith.constant 0 : i32
    %c0_i32_1 = arith.constant 0 : i32
    return %c0_i32, %c0_i32_0 : i32, i32
  }
  func.func @transform_9(%arg0: i32) -> (i32, i32, i32) {
    %c0_i32 = arith.constant 0 : i32
    %c0_i32_0 = arith.constant 0 : i32
    %c0_i32_1 = arith.constant 0 : i32
    %c0_i32_2 = arith.constant 0 : i32
    return %c0_i32, %c0_i32_0, %c0_i32_1 : i32, i32, i32
  }
  func.func @transform_10(%arg0: i32) -> (i32, i32) {
    %c0_i32 = arith.constant 0 : i32
    %c0_i32_0 = arith.constant 0 : i32
    %c0_i32_1 = arith.constant 0 : i32
    return %c0_i32, %c0_i32_0 : i32, i32
  }
  func.func @transform_11(%arg0: i32) -> (i32, i32, i32) {
    %c0_i32 = arith.constant 0 : i32
    %c0_i32_0 = arith.constant 0 : i32
    %c0_i32_1 = arith.constant 0 : i32
    return %arg0, %c0_i32, %c0_i32_0 : i32, i32, i32
  }
}

</mosaic_0001>

<bundles_post_ra>
// kernel: tpu_custom_call.1
= control target key start
LH: loop header
LB: loop body
LE: loop exit
PB: predicated region body
PF: predicated region fallthrough
CT: control target
= control target key end

     0   :  { %s1347_s17 = smov 0   ;;  %s1705_s0 = inlined_call_operand.vmem [shape: f32[2,4,16], index: 0, kind: input, shape index: {}]   ;;  %s1706_s1 = inlined_call_operand.vmem [shape: f32[2,32,4], index: 1, kind: input, shape index: {}]   ;;  %s1707_s2 = inlined_call_operand.vmem [shape: f32[32,1], index: 2, kind: input, shape index: {}]   ;;  %s1708_s3 = inlined_call_operand.vmem [shape: f32[2,32,32], index: 3, kind: input, shape index: {}]   ;;  %s1709_s4 = inlined_call_operand.vmem [shape: f32[32,1], index: 4, kind: input, shape index: {}]   ;;  %s1710_s5 = inlined_call_operand.vmem [shape: f32[32,4], index: 5, kind: input, shape index: {}]   ;;  %s1711_s6 = inlined_call_operand.vmem [shape: f32[32,1], index: 6, kind: input, shape index: {}]   ;;  %s1712_s7 = inlined_call_operand.vmem [shape: f32[2,32,32], index: 7, kind: input, shape index: {}]   ;;  %s1713_s8 = inlined_call_operand.vmem [shape: f32[32,1], index: 8, kind: input, shape index: {}]   ;;  %s1714_s9 = inlined_call_operand.vmem [shape: f32[2,32,32], index: 9, kind: input, shape index: {}]   ;;  %s1715_s10 = inlined_call_operand.vmem [shape: f32[32,1], index: 10, kind: input, shape index: {}]   ;;  %s1716_s11 = inlined_call_operand.vmem [shape: f32[2,32,16], index: 11, kind: output, shape index: {}]  }
   0x1 LB: > { %s1179_s18 = sadd.s32 4294967295, %s1281_s17   ;;  %p1183_p0 = scmp.ge.s32.totalorder %s1281_s17, 1  ;;  %s1281_s17 = sphi %s1347_s17, %s21_s17  }
   0x2   : > { %p336_p1 = scmp.lt.s32.totalorder %s1281_s17, 3 }
   0x4   : > { %p337_p2 = pnand %p1183_p0, %p336_p1 }
   0x5   : > { %p375_p3 = scmp.lt.s32.totalorder (!%p337_p2), %s1179_s18, 1  ;;  %s1283_s23 = smov (!%p337_p2), 16  }
   0x6   : > { %340 = sbr.rel (%p337_p2) target bundleno = 2038 (0x7f6), region = 64  ;;  %s1284_s24 = smov (!%p337_p2), 113  }
   0x7   : > { %s1286_s28 = smov (!%p337_p2), 114  }
   0xb   : > { %s1718_s18 = smov (!%p375_p3, %s1179_s18), 1  ;;  %vm394_vm0 = vcmask 1047680   ;;  %v499_v5 = vld [vmem:[%s1707_s2] sm:$0xff]  ;;  %v1285_v6 = vmov 0   ;;  %v401_v7 = vlaneseq  ;;  %vm422_vm2 = vcmask 1043456   ;;  %v391_v11 = vld [vmem:[%s1706_s1 + $0x8] sm:$0xff] }
   0xc   : > { %s1184_s19 = sshll.u32 %s1718_s18, 2  ;;  %1274 = vset.pattern.permute.xlu0 %v1285_v6  ;;  %1273 = vset.pattern.permute.xlu2 %v1285_v6  ;;  %vm409_vm3 = vcmask 31744   ;;  %v390_v12 = vld [vmem:[%s1706_s1] sm:$0xff]  ;;  %v392_v13 = vld [vmem:[%s1706_s1 + $0x10] sm:$0xff]  ;;  %v393_v14 = vld [vmem:[%s1706_s1 + $0x18] sm:$0xff]  ;;  %vm584_vm4 = vcmask 261120  }
   0xd   : > { %s378_s22 = scalar_lea.vmem %s1705_s0, %s1184_s19  ;;  %1272 = vset.pattern.permute.xlu1 %v1285_v6  ;;  %v1369_v8 = vand.u32 127, %v401_v7  ;;  %v501_v15 = vld [vmem:[%s1707_s2 + $0x10] sm:$0xff]  ;;  %v502_v16 = vld [vmem:[%s1707_s2 + $0x18] sm:$0xff]  ;;  %v1187_v17 = vld [vmem:[%s1706_s1 + $0x20] sm:$0xff]  ;;  %s1256_s29 = sshll.u32 %s1718_s18, 5  ;;  %vm1119_vm6 = vcmask 130048  }
   0xe   : > { %v384_v0 = vld [vmem:[%s378_s22] sm:$0xf]  ;;  %515 = vperm.xlu2 %1273, %v501_v15   ;;  %v500_v18 = vld [vmem:[%s1707_s2 + $0x8] sm:$0xff]  ;;  %v1189_v20 = vld [vmem:[%s1706_s1 + $0x30] sm:$0xff] }
   0xf   : > { %395 = vrot.lane.b32.xlu0 %v384_v0, %s1283_s23  ;;  %vm403_vm1 = vcmp.ge.s32.totalorder %v1369_v8, 1  ;;  %v1188_v19 = vld [vmem:[%s1706_s1 + $0x28] sm:$0xff]  ;;  %v1190_v21 = vld [vmem:[%s1706_s1 + $0x38] sm:$0xff]  ;;  %v699_v48 = vld [vmem:[%s1710_s5] sm:$0xff]  ;;  %vm809_vm5 = vcmp.ge.s32.totalorder %v1369_v8, 2 }
  0x10   : > { %v700_v49 = vld [vmem:[%s1710_s5 + $0x8] sm:$0xff]  ;;  %v701_v56 = vld [vmem:[%s1710_s5 + $0x10] sm:$0xff]  ;;  %v702_v59 = vld [vmem:[%s1710_s5 + $0x18] sm:$0xff] }
  0x11   : > { %v670_v60 = vld [vmem:[%s1709_s4 + $0x18] sm:$0xff]  ;;  %v668_v61 = vld [vmem:[%s1709_s4 + $0x8] sm:$0xff] }
  0x16   : > { %510 = vperm.xlu2 %1273, %v500_v18   ;;  %v536_v18 = vld [vmem:[%s1708_s3] sm:$0xff] }
  0x68   : > { %v516_v26 = vpop.permute.xlu2 %515 }
  0x70   : > { %v511_v40 = vpop.permute.xlu2 %510 }
  0x81   : > { %v396_v1 = vpop.permute.xlu0 %395 }
  0x82   : > { %v397_v2 = vsel %vm394_vm0, %v396_v1, %v384_v0  ;;  %v669_v1 = vld [vmem:[%s1709_s4 + $0x10] sm:$0xff] }
  0x83   : > { %398 = vrot.lane.b32.xlu0 %v397_v2, %s1283_s23  ;;  %v705_v2 = vld [vmem:[%s1711_s6 + $0x10] sm:$0xff] }
  0x8b   : > { %505 = vperm.xlu0 %1274, %v499_v5   ;;  %v703_v5 = vld [vmem:[%s1711_s6] sm:$0xff] }
  0xf5   : > { %v399_v3 = vpop.permute.xlu0 %398 }
  0xf6   : > { %v400_v4 = vsel %vm394_vm0, %v399_v3, %v384_v0 }
  0xf7   : > { %405 = vrot.lane.b32.xlu1 %v400_v4, %s1284_s24 }
  0xfd   : > { %v506_v34 = vpop.permute.xlu0 %505 }
  0xff   : > { %520 = vperm.xlu1 %1272, %v502_v16   ;;  %v1204_v16 = vld [vmem:[%s1708_s3 + $0x38] sm:$0xff] }
 0x169   : > { %v406_v9 = vpop.permute.xlu1 %405 }
 0x16a   : > { %v408_v10 = vsel %vm403_vm1, %v406_v9, 0.0  ;;  %v706_v9 = vld [vmem:[%s1711_s6 + $0x18] sm:$0xff] }
 0x16b   : > { %1191 = vmatpush.msk.msra.mxu0 %vm422_vm2, %v408_v10  ;;  %1257 = vmatpush.msk.msra.mxu1 %vm422_vm2, %v408_v10 }
 0x16c   : > { %1258 = vmatpush.msk.msra.mxu2 %vm422_vm2, %v408_v10  ;;  %1259 = vmatpush.msk.msra.mxu3 %vm422_vm2, %v408_v10  ;;  %v667_v10 = vld [vmem:[%s1709_s4] sm:$0xff] }
 0x16d   : > { %1193 = vmatmul.msk.f32.vlgmr.msra.gmra.mxu1 %vm409_vm3, %v391_v11  ;;  %1192 = vmatmul.msk.f32.vlgmr.msra.gmra.mxu0 %vm409_vm3, %v390_v12  ;;  %v1201_v11 = vld [vmem:[%s1708_s3 + $0x20] sm:$0xff]  ;;  %v1202_v12 = vld [vmem:[%s1708_s3 + $0x28] sm:$0xff] }
 0x16e   : > { %1196 = vmatpush.msk.msrb.mxu1 %vm422_vm2, %v384_v0  ;;  %1194 = vmatmul.msk.f32.vlgmr.msra.gmra.mxu2 %vm409_vm3, %v392_v13  ;;  %v1203_v13 = vld [vmem:[%s1708_s3 + $0x30] sm:$0xff] }
 0x16f   : > { %1195 = vmatmul.msk.f32.vlgmr.msra.gmra.mxu3 %vm409_vm3, %v393_v14  ;;  %1217 = vmatpush.msk.msrb.mxu0 %vm422_vm2, %v384_v0  ;;  %v704_v0 = vld [vmem:[%s1711_s6 + $0x8] sm:$0xff] }
 0x171   : > { %v521_v36 = vpop.permute.xlu1 %520 }
 0x175   : > { %1197 = vmatmul.msk.f32.vlgmr.msrb.gmra.mxu1 %vm409_vm3, %v1187_v17  ;;  %1218 = vmatmul.msk.f32.vlgmr.msrb.gmra.mxu0 %vm409_vm3, %v699_v48 }
 0x17d   : > { %1198 = vmatmul.msk.f32.gmra.mxu1 %vm409_vm3, %v1188_v19  ;;  %1219 = vmatmul.msk.f32.gmra.mxu0 %vm409_vm3, %v700_v49 }
 0x185   : > { %1199 = vmatmul.msk.f32.gmra.mxu1 %vm409_vm3, %v1189_v20  ;;  %1220 = vmatmul.msk.f32.gmra.mxu0 %vm409_vm3, %v701_v56  ;;  %v537_v20 = vld [vmem:[%s1708_s3 + $0x8] sm:$0xff] }
 0x18d   : > { %1200 = vmatmul.msk.f32.gmra.mxu1 %vm409_vm3, %v1190_v21  ;;  %1221 = vmatmul.msk.f32.gmra.mxu0 %vm409_vm3, %v702_v59  ;;  %v538_v21 = vld [vmem:[%s1708_s3 + $0x10] sm:$0xff] }
 0x1ea   : > { %v446_v22 = vpop.f32.mrf.mxu1  ;;  %v443_v29 = vpop.f32.mrf.mxu0 }
 0x1f1   : > { %v449_v25 = vpop.f32.mrf.mxu2 }
 0x1f2   : > { %v487_v23 = vpop.f32.mrf.mxu1  ;;  %v452_v33 = vpop.f32.mrf.mxu3 }
 0x1f3   : > { %v488_v32 = vadd.f32 %v487_v23, %v443_v29 }
 0x1f5   : > { %v523_v39 = vadd.f32 %v506_v34, %v488_v32 }
 0x1f7   : > { %v527_v44 = vmax.f32 %v523_v39, 0.0 }
 0x1fa   : > { %v490_v24 = vpop.f32.mrf.mxu1 }
 0x1fb   : > { %v491_v37 = vadd.f32 %v490_v24, %v446_v22  ;;  %v539_v22 = vld [vmem:[%s1708_s3 + $0x18] sm:$0xff] }
 0x1fd   : > { %v524_v42 = vadd.f32 %v511_v40, %v491_v37 }
 0x1ff   : > { %v528_v45 = vmax.f32 %v524_v42, 0.0 }
 0x202   : > { %v493_v27 = vpop.f32.mrf.mxu1 }
 0x203   : > { %v494_v28 = vadd.f32 %v493_v27, %v449_v25  ;;  %v756_v25 = vpop.f32.mrf.mxu0 }
 0x205   : > { %v525_v30 = vadd.f32 %v516_v26, %v494_v28 }
 0x207   : > { %v529_v31 = vmax.f32 %v525_v30, 0.0 }
 0x209   : > { %546 = vrot.lane.b32.xlu2 %v529_v31, %s1283_s23 }
 0x20a   : > { %v496_v35 = vpop.f32.mrf.mxu1 }
 0x20b   : > { %v497_v38 = vadd.f32 %v496_v35, %v452_v33  ;;  %v759_v32 = vpop.f32.mrf.mxu0 }
 0x20d   : > { %v526_v41 = vadd.f32 %v521_v36, %v497_v38 }
 0x20f   : > { %v530_v43 = vmax.f32 %v526_v41, 0.0 }
 0x211   : > { %549 = vrot.lane.b32.xlu1 %v530_v43, %s1283_s23  ;;  %650 = vmatpush.msrb.mxu3 %v530_v43 }
 0x212   : > { %540 = vrot.lane.b32.xlu2 %v527_v44, %s1283_s23 }
 0x213   : > { %651 = vmatpush.msrb.mxu3 %v529_v31 }
 0x215   : > { %652 = vmatpush.msrb.mxu3 %v528_v45 }
 0x217   : > { %653 = vmatpush.msrb.mxu3 %v527_v44 }
 0x218   : > { %1213 = vmatmul.msk.f32.vlgmr.msrb.gmra.mxu3 %vm584_vm4, %v1201_v11 }
 0x219   : > { %543 = vrot.lane.b32.xlu1 %v528_v45, %s1283_s23 }
 0x220   : > { %1214 = vmatmul.msk.f32.gmra.mxu3 %vm584_vm4, %v1202_v12 }
 0x228   : > { %1215 = vmatmul.msk.f32.gmra.mxu3 %vm584_vm4, %v1203_v13 }
 0x230   : > { %1216 = vmatmul.msk.f32.gmra.mxu3 %vm584_vm4, %v1204_v16 }
 0x263   : > { %v547_v46 = vpop.permute.xlu2 %546 }
 0x264   : > { %v548_v47 = vsel %vm394_vm0, %v547_v46, %v529_v31 }
 0x265   : > { %556 = vrot.lane.b32.xlu1 %v548_v47, %s1283_s23 }
 0x26c   : > { %v541_v52 = vpop.permute.xlu2 %540 }
 0x26d   : > { %v542_v55 = vsel %vm394_vm0, %v541_v52, %v527_v44 }
 0x283   : > { %v550_v50 = vpop.permute.xlu1 %549 }
 0x284   : > { %v551_v51 = vsel %vm394_vm0, %v550_v50, %v530_v43 }
 0x285   : > { %558 = vrot.lane.b32.xlu0 %v551_v51, %s1283_s23 }
 0x28b   : > { %v544_v53 = vpop.permute.xlu1 %543 }
 0x28c   : > { %v545_v54 = vsel %vm394_vm0, %v544_v53, %v528_v45 }
 0x28d   : > { %554 = vrot.lane.b32.xlu2 %v545_v54, %s1283_s23  ;;  %552 = vrot.lane.b32.xlu0 %v542_v55, %s1283_s23 }
 0x29b   : > { %v655_v24 = vpop.f32.mrf.mxu3 }
 0x2a3   : > { %v658_v28 = vpop.f32.mrf.mxu3 }
 0x2ab   : > { %v661_v35 = vpop.f32.mrf.mxu3 }
 0x2b3   : > { %v664_v48 = vpop.f32.mrf.mxu3 }
 0x2d7   : > { %v557_v57 = vpop.permute.xlu1 %556 }
 0x2d8   : > { %v562_v58 = vsel %vm394_vm0, %v557_v57, %v529_v31 }
 0x2d9   : > { %572 = vrot.lane.b32.xlu2 %v562_v58, %s1284_s24 }
 0x2e1   : > { %688 = vperm.xlu2 %1273, %v670_v60  }
 0x2e7   : > { %v555_v62 = vpop.permute.xlu2 %554 }
 0x2e8   : > { %v561_v63 = vsel %vm394_vm0, %v555_v62, %v528_v45 }
 0x2e9   : > { %678 = vperm.xlu2 %1273, %v668_v61   ;;  %570 = vrot.lane.b32.xlu0 %v561_v63, %s1284_s24 }
 0x2f1   : > { %714 = vperm.xlu2 %1273, %v704_v0   ;;  %683 = vperm.xlu0 %1274, %v669_v1  }
 0x2f7   : > { %v559_v3 = vpop.permute.xlu0 %558 }
 0x2f8   : > { %v563_v4 = vsel %vm394_vm0, %v559_v3, %v530_v43  ;;  %v762_v43 = vpop.f32.mrf.mxu0 }
 0x2f9   : > { %719 = vperm.xlu0 %1274, %v705_v2   ;;  %574 = vrot.lane.b32.xlu1 %v563_v4, %s1284_s24 }
 0x2ff   : > { %v553_v6 = vpop.permute.xlu0 %552 }
 0x300   : > { %v560_v7 = vsel %vm394_vm0, %v553_v6, %v527_v44  ;;  %v765_v54 = vpop.f32.mrf.mxu0 }
 0x301   : > { %709 = vperm.xlu0 %1274, %v703_v5   ;;  %568 = vrot.lane.b32.xlu1 %v560_v7, %s1284_s24  ;;  %s383_s24 = scalar_lea.vmem %s1716_s11, %s1256_s29 }
 0x309   : > { %724 = vperm.xlu1 %1272, %v706_v9  }
 0x311   : > { %673 = vperm.xlu1 %1272, %v667_v10  }
 0x333   : > { %v573_v15 = vpop.permute.xlu2 %572 }
 0x33b   : > { %v689_v23 = vpop.permute.xlu2 %688 }
 0x343   : > { %v679_v26 = vpop.permute.xlu2 %678 }
 0x34b   : > { %v715_v33 = vpop.permute.xlu2 %714 }
 0x34c   : > { %v760_v36 = vadd.f32 %v759_v32, %v715_v33  ;;  %v782_v33 = vld [vmem:[%s1712_s7 + $0x8] sm:$0xff] }
 0x35b   : > { %v571_v17 = vpop.permute.xlu0 %570 }
 0x363   : > { %v684_v29 = vpop.permute.xlu0 %683 }
 0x36b   : > { %v575_v14 = vpop.permute.xlu1 %574  ;;  %v720_v44 = vpop.permute.xlu0 %719 }
 0x36c   : > { %1205 = vmatpush.msk.msrb.mxu2 %vm403_vm1, %v575_v14  ;;  %v763_v46 = vadd.f32 %v762_v43, %v720_v44  ;;  %v915_v14 = vld [vmem:[%s1713_s8 + $0x18] sm:$0xff] }
 0x36e   : > { %1206 = vmatpush.msk.msrb.mxu2 %vm403_vm1, %v573_v15 }
 0x370   : > { %1207 = vmatpush.msk.msrb.mxu2 %vm403_vm1, %v571_v17 }
 0x373   : > { %v569_v19 = vpop.permute.xlu1 %568  ;;  %v710_v60 = vpop.permute.xlu0 %709 }
 0x374   : > { %1208 = vmatpush.msk.msrb.mxu2 %vm403_vm1, %v569_v19  ;;  %v757_v63 = vadd.f32 %v756_v25, %v710_v60  ;;  %v912_v19 = vld [vmem:[%s1713_s8] sm:$0xff]  ;;  %v1223_v25 = vld [vmem:[%s1712_s7 + $0x28] sm:$0xff] }
 0x375   : > { %1209 = vmatmul.msk.f32.vlgmr.msrb.gmra.mxu2 %vm584_vm4, %v536_v18 }
 0x37b   : > { %v725_v39 = vpop.permute.xlu1 %724 }
 0x37c   : > { %v766_v58 = vadd.f32 %v765_v54, %v725_v39 }
 0x37d   : > { %1210 = vmatmul.msk.f32.gmra.mxu2 %vm584_vm4, %v537_v20 }
 0x383   : > { %v674_v55 = vpop.permute.xlu1 %673 }
 0x385   : > { %1211 = vmatmul.msk.f32.gmra.mxu2 %vm584_vm4, %v538_v21 }
 0x38d   : > { %1212 = vmatmul.msk.f32.gmra.mxu2 %vm584_vm4, %v539_v22  ;;  %v913_v22 = vld [vmem:[%s1713_s8 + $0x8] sm:$0xff] }
 0x3f8   : > { %v614_v27 = vpop.f32.mrf.mxu2 }
 0x3f9   : > { %v656_v49 = vadd.f32 %v655_v24, %v614_v27  ;;  %v1222_v24 = vld [vmem:[%s1712_s7 + $0x20] sm:$0xff]  ;;  %v1225_v27 = vld [vmem:[%s1712_s7 + $0x38] sm:$0xff] }
 0x3fb   : > { %v691_v56 = vadd.f32 %v674_v55, %v656_v49 }
 0x3fd   : > { %v695_v61 = vmax.f32 %v691_v56, 0.0 }
 0x3ff   : > { %v768_v1 = vadd.f32 %v757_v63, %v695_v61 }
 0x400   : > { %v617_v30 = vpop.f32.mrf.mxu2 }
 0x401   : > { %v659_v31 = vadd.f32 %v658_v28, %v617_v30  ;;  %v1535_v2 = vmax.f32 %v768_v1, 0.0 }
 0x403   : > { %v692_v34 = vadd.f32 %v679_v26, %v659_v31  ;;  %v1224_v26 = vld [vmem:[%s1712_s7 + $0x30] sm:$0xff]  ;;  %v781_v31 = vld [vmem:[%s1712_s7] sm:$0xff] }
 0x405   : > { %v696_v37 = vmax.f32 %v692_v34, 0.0  ;;  %v783_v34 = vld [vmem:[%s1712_s7 + $0x10] sm:$0xff] }
 0x407   : > { %v769_v38 = vadd.f32 %v760_v36, %v696_v37 }
 0x408   : > { %v620_v40 = vpop.f32.mrf.mxu2 }
 0x409   : > { %v1521_v41 = vmax.f32 %v769_v38, 0.0  ;;  %v662_v42 = vadd.f32 %v661_v35, %v620_v40  ;;  %v784_v35 = vld [vmem:[%s1712_s7 + $0x18] sm:$0xff] }
 0x40b   : > { %v693_v45 = vadd.f32 %v684_v29, %v662_v42  ;;  %788 = vrot.lane.b32.xlu0 %v1521_v41, %s1283_s23 }
 0x40d   : > { %v697_v47 = vmax.f32 %v693_v45, 0.0 }
 0x40f   : > { %v770_v50 = vadd.f32 %v763_v46, %v697_v47 }
 0x410   : > { %v623_v51 = vpop.f32.mrf.mxu2 }
 0x411   : > { %v1525_v52 = vmax.f32 %v770_v50, 0.0  ;;  %v665_v53 = vadd.f32 %v664_v48, %v623_v51 }
 0x413   : > { %v694_v57 = vadd.f32 %v689_v23, %v665_v53  ;;  %791 = vrot.lane.b32.xlu2 %v1525_v52, %s1283_s23  ;;  %v914_v23 = vld [vmem:[%s1713_s8 + $0x10] sm:$0xff] }
 0x415   : > { %v698_v59 = vmax.f32 %v694_v57, 0.0 }
 0x417   : > { %v771_v62 = vadd.f32 %v766_v58, %v698_v59 }
 0x419   : > { %v1529_v0 = vmax.f32 %v771_v62, 0.0 }
 0x41b   : > { %794 = vrot.lane.b32.xlu1 %v1529_v0, %s1283_s23  ;;  %895 = vmatpush.msra.mxu2 %v1529_v0 }
 0x41d   : > { %896 = vmatpush.msra.mxu2 %v1525_v52 }
 0x41f   : > { %897 = vmatpush.msra.mxu2 %v1521_v41 }
 0x421   : > { %898 = vmatpush.msra.mxu2 %v1535_v2 }
 0x422   : > { %1234 = vmatmul.msk.f32.vlgmr.msra.gmra.mxu2 %vm584_vm4, %v1222_v24 }
 0x423   : > { %785 = vrot.lane.b32.xlu1 %v1535_v2, %s1283_s23 }
 0x42a   : > { %1235 = vmatmul.msk.f32.gmra.mxu2 %vm584_vm4, %v1223_v25 }
 0x432   : > { %1236 = vmatmul.msk.f32.gmra.mxu2 %vm584_vm4, %v1224_v26  ;;  %v1241_v26 = vld [vmem:[%s1714_s9 + $0x38] sm:$0xff] }
 0x43a   : > { %1237 = vmatmul.msk.f32.gmra.mxu2 %vm584_vm4, %v1225_v27 }
 0x46d   : > { %v792_v3 = vpop.permute.xlu2 %791 }
 0x46e   : > { %v793_v4 = vsel %vm394_vm0, %v792_v3, %v1525_v52 }
 0x46f   : > { %801 = vrot.lane.b32.xlu0 %v793_v4, %s1283_s23 }
 0x47d   : > { %v789_v5 = vpop.permute.xlu0 %788 }
 0x47e   : > { %v790_v6 = vsel %vm394_vm0, %v789_v5, %v1521_v41 }
 0x47f   : > { %799 = vrot.lane.b32.xlu1 %v790_v6, %s1283_s23 }
 0x48d   : > { %v795_v7 = vpop.permute.xlu1 %794 }
 0x48e   : > { %v796_v9 = vsel %vm394_vm0, %v795_v7, %v1529_v0 }
 0x48f   : > { %803 = vrot.lane.b32.xlu2 %v796_v9, %s1283_s23 }
 0x495   : > { %v786_v10 = vpop.permute.xlu1 %785 }
 0x496   : > { %v787_v11 = vsel %vm394_vm0, %v786_v10, %v1535_v2 }
 0x497   : > { %797 = vrot.lane.b32.xlu2 %v787_v11, %s1283_s23  ;;  %v1080_v11 = vld [vmem:[%s1715_s10 + $0x8] sm:$0xff] }
 0x4a5   : > { %v900_v36 = vpop.f32.mrf.mxu2 }
 0x4ad   : > { %v903_v38 = vpop.f32.mrf.mxu2 }
 0x4b5   : > { %v906_v44 = vpop.f32.mrf.mxu2 }
 0x4bd   : > { %v909_v53 = vpop.f32.mrf.mxu2 }
 0x4e1   : > { %v802_v12 = vpop.permute.xlu0 %801 }
 0x4e2   : > { %v807_v13 = vsel %vm394_vm0, %v802_v12, %v1525_v52 }
 0x4e3   : > { %818 = vrot.lane.b32.xlu1 %v807_v13, %s1286_s28 }
 0x4e9   : > { %v804_v15 = vpop.permute.xlu2 %803 }
 0x4ea   : > { %v808_v16 = vsel %vm394_vm0, %v804_v15, %v1529_v0 }
 0x4eb   : > { %820 = vrot.lane.b32.xlu0 %v808_v16, %s1286_s28  ;;  %933 = vperm.xlu1 %1272, %v915_v14   ;;  %v1081_v16 = vld [vmem:[%s1715_s10 + $0x10] sm:$0xff] }
 0x4f1   : > { %v798_v17 = vpop.permute.xlu2 %797  ;;  %v800_v18 = vpop.permute.xlu1 %799 }
 0x4f2   : > { %v805_v20 = vsel %vm394_vm0, %v798_v17, %v1535_v2  ;;  %v806_v21 = vsel %vm394_vm0, %v800_v18, %v1521_v41 }
 0x4f3   : > { %814 = vrot.lane.b32.xlu0 %v805_v20, %s1286_s28  ;;  %816 = vrot.lane.b32.xlu2 %v806_v21, %s1286_s28  ;;  %v1082_v20 = vld [vmem:[%s1715_s10 + $0x18] sm:$0xff]  ;;  %v1238_v21 = vld [vmem:[%s1714_s9 + $0x20] sm:$0xff] }
 0x4f4   : > { %918 = vperm.xlu1 %1272, %v912_v19   ;;  %v1079_v19 = vld [vmem:[%s1715_s10] sm:$0xff] }
 0x4fb   : > { %923 = vperm.xlu0 %1274, %v913_v22   ;;  %928 = vperm.xlu2 %1273, %v914_v23   ;;  %v1239_v22 = vld [vmem:[%s1714_s9 + $0x28] sm:$0xff]  ;;  %v1240_v23 = vld [vmem:[%s1714_s9 + $0x30] sm:$0xff] }
 0x54d   : > { %v817_v30 = vpop.permute.xlu2 %816 }
 0x555   : > { %v819_v29 = vpop.permute.xlu1 %818  ;;  %v929_v48 = vpop.permute.xlu2 %928 }
 0x55d   : > { %v821_v28 = vpop.permute.xlu0 %820  ;;  %v934_v50 = vpop.permute.xlu1 %933 }
 0x55e   : > { %1226 = vmatpush.msk.msra.mxu1 %vm809_vm5, %v821_v28  ;;  %v949_v28 = vld [vmem:[%s1714_s9] sm:$0xff] }
 0x560   : > { %1227 = vmatpush.msk.msra.mxu1 %vm809_vm5, %v819_v29 }
 0x562   : > { %1228 = vmatpush.msk.msra.mxu1 %vm809_vm5, %v817_v30  ;;  %v950_v30 = vld [vmem:[%s1714_s9 + $0x8] sm:$0xff] }
 0x565   : > { %v815_v32 = vpop.permute.xlu0 %814 }
 0x566   : > { %1229 = vmatpush.msk.msra.mxu1 %vm809_vm5, %v815_v32  ;;  %v919_v59 = vpop.permute.xlu1 %918  ;;  %v952_v32 = vld [vmem:[%s1714_s9 + $0x18] sm:$0xff] }
 0x567   : > { %1230 = vmatmul.msk.f32.vlgmr.msra.gmra.mxu1 %vm584_vm4, %v781_v31  ;;  %v951_v31 = vld [vmem:[%s1714_s9 + $0x10] sm:$0xff] }
 0x56d   : > { %v924_v42 = vpop.permute.xlu0 %923 }
 0x56f   : > { %1231 = vmatmul.msk.f32.gmra.mxu1 %vm584_vm4, %v782_v33 }
 0x577   : > { %1232 = vmatmul.msk.f32.gmra.mxu1 %vm584_vm4, %v783_v34 }
 0x57f   : > { %1233 = vmatmul.msk.f32.gmra.mxu1 %vm584_vm4, %v784_v35 }
 0x5e4   : > { %v859_v37 = vpop.f32.mrf.mxu1 }
 0x5e5   : > { %v901_v56 = vadd.f32 %v900_v36, %v859_v37 }
 0x5e7   : > { %v936_v60 = vadd.f32 %v919_v59, %v901_v56 }
 0x5e9   : > { %v940_v61 = vmax.f32 %v936_v60, 0.0 }
 0x5ec   : > { %v862_v39 = vpop.f32.mrf.mxu1 }
 0x5ed   : > { %v904_v40 = vadd.f32 %v903_v38, %v862_v39 }
 0x5ef   : > { %v937_v43 = vadd.f32 %v924_v42, %v904_v40 }
 0x5f1   : > { %v941_v45 = vmax.f32 %v937_v43, 0.0 }
 0x5f3   : > { %956 = vrot.lane.b32.xlu1 %v941_v45, %s1283_s23 }
 0x5f4   : > { %v865_v46 = vpop.f32.mrf.mxu1 }
 0x5f5   : > { %v907_v47 = vadd.f32 %v906_v44, %v865_v46 }
 0x5f7   : > { %v938_v49 = vadd.f32 %v929_v48, %v907_v47 }
 0x5f9   : > { %v942_v51 = vmax.f32 %v938_v49, 0.0 }
 0x5fb   : > { %959 = vrot.lane.b32.xlu0 %v942_v51, %s1283_s23 }
 0x5fc   : > { %v868_v54 = vpop.f32.mrf.mxu1 }
 0x5fd   : > { %v910_v55 = vadd.f32 %v909_v53, %v868_v54 }
 0x5ff   : > { %v939_v57 = vadd.f32 %v934_v50, %v910_v55 }
 0x601   : > { %v943_v58 = vmax.f32 %v939_v57, 0.0 }
 0x603   : > { %962 = vrot.lane.b32.xlu2 %v943_v58, %s1283_s23  ;;  %1062 = vmatpush.msra.mxu0 %v943_v58 }
 0x605   : > { %1063 = vmatpush.msra.mxu0 %v942_v51 }
 0x607   : > { %1064 = vmatpush.msra.mxu0 %v941_v45 }
 0x609   : > { %1065 = vmatpush.msra.mxu0 %v940_v61 }
 0x60a   : > { %1250 = vmatmul.msk.f32.vlgmr.msra.gmra.mxu0 %vm584_vm4, %v1238_v21 }
 0x60b   : > { %953 = vrot.lane.b32.xlu2 %v940_v61, %s1283_s23 }
 0x612   : > { %1251 = vmatmul.msk.f32.gmra.mxu0 %vm584_vm4, %v1239_v22 }
 0x61a   : > { %1252 = vmatmul.msk.f32.gmra.mxu0 %vm584_vm4, %v1240_v23 }
 0x622   : > { %1253 = vmatmul.msk.f32.gmra.mxu0 %vm584_vm4, %v1241_v26 }
 0x65d   : > { %v963_v62 = vpop.permute.xlu2 %962 }
 0x65e   : > { %v964_v63 = vsel %vm394_vm0, %v963_v62, %v943_v58 }
 0x65f   : > { %971 = vrot.lane.b32.xlu0 %v964_v63, %s1283_s23 }
 0x665   : > { %v954_v1 = vpop.permute.xlu2 %953  ;;  %v957_v3 = vpop.permute.xlu1 %956 }
 0x666   : > { %v955_v4 = vsel %vm394_vm0, %v954_v1, %v940_v61  ;;  %v958_v5 = vsel %vm394_vm0, %v957_v3, %v941_v45 }
 0x667   : > { %965 = vrot.lane.b32.xlu0 %v955_v4, %s1283_s23  ;;  %967 = vrot.lane.b32.xlu2 %v958_v5, %s1283_s23 }
 0x66d   : > { %v960_v6 = vpop.permute.xlu0 %959 }
 0x66e   : > { %v961_v7 = vsel %vm394_vm0, %v960_v6, %v942_v51 }
 0x66f   : > { %969 = vrot.lane.b32.xlu1 %v961_v7, %s1283_s23 }
 0x687   : > { %v1067_v8 = vpop.f32.mrf.mxu0 }
 0x68f   : > { %v1070_v36 = vpop.f32.mrf.mxu0 }
 0x697   : > { %v1073_v46 = vpop.f32.mrf.mxu0 }
 0x69f   : > { %v1076_v55 = vpop.f32.mrf.mxu0 }
 0x6c1   : > { %v968_v9 = vpop.permute.xlu2 %967 }
 0x6c2   : > { %v974_v10 = vsel %vm394_vm0, %v968_v9, %v941_v45 }
 0x6c3   : > { %983 = vrot.lane.b32.xlu0 %v974_v10, %s1286_s28 }
 0x6cb   : > { %1090 = vperm.xlu0 %1274, %v1080_v11  }
 0x6d1   : > { %v972_v12 = vpop.permute.xlu0 %971 }
 0x6d2   : > { %v976_v13 = vsel %vm394_vm0, %v972_v12, %v943_v58 }
 0x6d3   : > { %987 = vrot.lane.b32.xlu1 %v976_v13, %s1286_s28 }
 0x6d9   : > { %v966_v14 = vpop.permute.xlu0 %965 }
 0x6da   : > { %v973_v15 = vsel %vm394_vm0, %v966_v14, %v940_v61 }
 0x6db   : > { %981 = vrot.lane.b32.xlu1 %v973_v15, %s1286_s28 }
 0x6e1   : > { %v970_v17 = vpop.permute.xlu1 %969 }
 0x6e2   : > { %v975_v18 = vsel %vm394_vm0, %v970_v17, %v942_v51 }
 0x6e3   : > { %985 = vrot.lane.b32.xlu2 %v975_v18, %s1286_s28  ;;  %1095 = vperm.xlu1 %1272, %v1081_v16  }
 0x6eb   : > { %1085 = vperm.xlu2 %1273, %v1079_v19  }
 0x6f3   : > { %1100 = vperm.xlu2 %1273, %v1082_v20  }
 0x735   : > { %v984_v27 = vpop.permute.xlu0 %983 }
 0x73d   : > { %v986_v25 = vpop.permute.xlu2 %985  ;;  %v1091_v44 = vpop.permute.xlu0 %1090 }
 0x745   : > { %v988_v24 = vpop.permute.xlu1 %987  ;;  %v1086_v35 = vpop.permute.xlu2 %1085 }
 0x746   : > { %1242 = vmatpush.msk.msra.mxu3 %vm809_vm5, %v988_v24 }
 0x748   : > { %1243 = vmatpush.msk.msra.mxu3 %vm809_vm5, %v986_v25 }
 0x74a   : > { %1244 = vmatpush.msk.msra.mxu3 %vm809_vm5, %v984_v27 }
 0x74d   : > { %v982_v29 = vpop.permute.xlu1 %981  ;;  %v1101_v60 = vpop.permute.xlu2 %1100 }
 0x74e   : > { %1245 = vmatpush.msk.msra.mxu3 %vm809_vm5, %v982_v29 }
 0x74f   : > { %1246 = vmatmul.msk.f32.vlgmr.msra.gmra.mxu3 %vm584_vm4, %v949_v28 }
 0x757   : > { %1247 = vmatmul.msk.f32.gmra.mxu3 %vm584_vm4, %v950_v30 }
 0x75f   : > { %1248 = vmatmul.msk.f32.gmra.mxu3 %vm584_vm4, %v951_v31 }
 0x767   : > { %1249 = vmatmul.msk.f32.gmra.mxu3 %vm584_vm4, %v952_v32 }
 0x7d2   : > { %v1026_v33 = vpop.f32.mrf.mxu3 }
 0x7d3   : > { %v1068_v34 = vadd.f32 %v1067_v8, %v1026_v33 }
 0x7d5   : > { %v1103_v37 = vadd.f32 %v1086_v35, %v1068_v34 }
 0x7d7   : > { %v1107_v38 = vmax.f32 %v1103_v37, 0.0 }
 0x7d9   : > { %v1111_v39 = vadd.f32 %v1107_v38, %v1535_v2  ;;  %v1096_v2 = vpop.permute.xlu1 %1095 }
 0x7da   : > { %v1029_v40 = vpop.f32.mrf.mxu3 }
 0x7db   : > { %v1115_v42 = vmax.f32 %v1111_v39, 0.0  ;;  %v1071_v43 = vadd.f32 %v1070_v36, %v1029_v40 }
 0x7dd   : > { %1120 = vst.msk [vmem:[%s383_s24] sm:$0xff] %vm1119_vm6, %v1115_v42  ;;  %v1104_v45 = vadd.f32 %v1091_v44, %v1071_v43 }
 0x7df   : > { %v1108_v47 = vmax.f32 %v1104_v45, 0.0 }
 0x7e1   : > { %v1112_v48 = vadd.f32 %v1108_v47, %v1521_v41 }
 0x7e2   : > { %v1032_v49 = vpop.f32.mrf.mxu3 }
 0x7e3   : > { %v1116_v50 = vmax.f32 %v1112_v48, 0.0  ;;  %v1074_v51 = vadd.f32 %v1073_v46, %v1032_v49 }
 0x7e5   : > { %1121 = vst.msk [vmem:[%s383_s24 + $0x8] sm:$0xff] %vm1119_vm6, %v1116_v50  ;;  %v1105_v53 = vadd.f32 %v1096_v2, %v1074_v51 }
 0x7e7   : > { %v1109_v54 = vmax.f32 %v1105_v53, 0.0 }
 0x7e9   : > { %v1113_v56 = vadd.f32 %v1109_v54, %v1525_v52 }
 0x7ea   : > { %v1035_v57 = vpop.f32.mrf.mxu3 }
 0x7eb   : > { %v1117_v58 = vmax.f32 %v1113_v56, 0.0  ;;  %v1077_v59 = vadd.f32 %v1076_v55, %v1035_v57 }
 0x7ed   : > { %1122 = vst.msk [vmem:[%s383_s24 + $0x10] sm:$0xff] %vm1119_vm6, %v1117_v58  ;;  %v1106_v61 = vadd.f32 %v1101_v60, %v1077_v59 }
 0x7ef   : > { %v1110_v62 = vmax.f32 %v1106_v61, 0.0 }
 0x7f1   : > { %v1114_v41 = vadd.f32 %v1110_v62, %v1529_v0 }
 0x7f3   : > { %v1118_v63 = vmax.f32 %v1114_v41, 0.0 }
 0x7f5   : > { %1123 = vst.msk [vmem:[%s383_s24 + $0x18] sm:$0xff] %vm1119_vm6, %v1118_v63 }
 0x7f6 PF: > { %s21_s17 = sadd.s32 1, %s1281_s17  }
 0x7f7   : > { %p18_p4 = scmp.ge.s32.totalorder %s21_s17, 4  }
 0x7f9   :  { %20 = sbr.rel (!%p18_p4) target bundleno = 1 (0x1), region = 98 }

</bundles_post_ra>
